<compile_context>
chip_gen: v7x
topology: tpu7x:2x2x1
jax: 0.10.0
libtpu: 0.0.40
codegen_flags: <defaults>
</compile_context>

<pallas_src>
import jax
import jax.numpy as jnp
from jax.experimental import pallas as pl
from jax.experimental.pallas import tpu as pltpu


def _round_up(v, m):
    return ((v + m - 1) // m) * m


def _fit_tile(size, max_tile, align):
    """Largest tile <= max_tile (multiple of `align`) that minimizes padding of `size`."""
    nblocks = pl.cdiv(size, max_tile)
    return _round_up(pl.cdiv(size, nblocks), align)


def _vmem_limit_bytes():
    """64 MiB scoped budget on 128-MiB-VMEM chips (v5e/v6e), 32 MiB on v7x."""
    try:
        cap = pltpu.get_tpu_info().vmem_capacity_bytes
    except Exception:  # pragma: no cover - info query unavailable -> be conservative
        cap = None
    if cap is not None and cap >= 100 * 1024 * 1024:
        return 64 * 1024 * 1024
    return 32 * 1024 * 1024


# --------------------------------------------------------------------------
# Scalar (in=1, out=1) path: o = x * w + b on the VPU, lane-dense blocks,
# w/b held in SMEM.
# --------------------------------------------------------------------------
def _scalar_affine_kernel(w_ref, b_ref, x_ref, o_ref):
    # w_ref/b_ref are (1,1) SMEM scalars; x/o are (tm, 128) VMEM tiles.
    o_ref[...] = x_ref[...] * w_ref[0, 0] + b_ref[0, 0]


def _linear_scalar(x, weight, bias, *, tm_max=512):
    n = x.shape[0]
    lanes = 128

    # Reshape (N, 1) -> lane-dense (rows, 128): identical bytes, full vregs,
    # unmasked vector stores.  rows padded to a multiple of 8 sublanes.
    rows_p = _round_up(max(pl.cdiv(n, lanes), 1), 8)
    tm = min(tm_max, rows_p)
    rows_p = _round_up(rows_p, tm)
    total = rows_p * lanes

    x_flat = jnp.pad(x.reshape(-1), (0, total - n)).reshape(rows_p, lanes)
    w11 = weight.reshape(1, 1)
    b11 = bias.reshape(1, 1)

    out = pl.pallas_call(
        _scalar_affine_kernel,
        out_shape=jax.ShapeDtypeStruct((rows_p, lanes), jnp.float32),
        grid_spec=pltpu.PrefetchScalarGridSpec(
            num_scalar_prefetch=0,
            grid=(rows_p // tm,),
            in_specs=[
                pl.BlockSpec(memory_space=pltpu.MemorySpace.SMEM),  # weight scalar
                pl.BlockSpec(memory_space=pltpu.MemorySpace.SMEM),  # bias scalar
                pl.BlockSpec((tm, lanes), lambda i: (i, 0)),        # x slab tile
            ],
            out_specs=pl.BlockSpec((tm, lanes), lambda i: (i, 0)),
        ),
        compiler_params=pltpu.CompilerParams(
            dimension_semantics=("parallel",),
        ),
        cost_estimate=pl.CostEstimate(
            flops=2 * n,
            transcendentals=0,
            bytes_accessed=4 * (2 * n + 2),
        ),
    )(w11, b11, x_flat)
    # TODO(synk): for truly tiny N (the module's N=8 case) a plain jnp axpb would
    # avoid custom-call overhead entirely; kept on the Pallas path intentionally.
    return out.reshape(-1)[:n].reshape(n, 1)


# --------------------------------------------------------------------------
# General tiled path: (tm, tk) @ (tk, tn) MXU matmul + bias, K-reduction grid.
# Accumulates directly into o_ref (f32), bias is the k==0 initializer.
# --------------------------------------------------------------------------
def _matmul_bias_kernel(x_ref, w_ref, b_ref, o_ref):
    @pl.when(pl.program_id(2) == 0)
    def _init():
        o_ref[...] = jnp.broadcast_to(b_ref[...], o_ref.shape)

    # w is already K-major (in, out): contraction on the last dim of x and the
    # first dim of w — no in-kernel transpose / XLU relayout.
    o_ref[...] += jnp.dot(
        x_ref[...], w_ref[...], preferred_element_type=jnp.float32
    )


def _linear_general(x, weight, bias, *, tm_max=512, tn_max=512, tk_max=512):
    n, in_f = x.shape
    out_f = weight.shape[0]

    # Pre-transpose to K-major (in_f, out_f) in the wrapper (free XLA relayout).
    w_t = weight.T

    # Align to (8, 128), then pick tiles that divide the aligned sizes with at
    # most one alignment unit of extra padding (no round_up(size, max_tile)).
    n_p = _round_up(n, 8)
    k_p = _round_up(in_f, 128)
    o_p = _round_up(out_f, 128)

    tm = _fit_tile(n_p, tm_max, 8)
    tk = _fit_tile(k_p, tk_max, 128)
    tn = _fit_tile(o_p, tn_max, 128)

    n_p = _round_up(n_p, tm)
    k_p = _round_up(k_p, tk)
    o_p = _round_up(o_p, tn)

    # If the parallel (M, N) grid collapsed to a single block, split M in two so
    # the two TensorCores of a v7x chip (megacore) both get work; harmless
    # elsewhere (one extra ~0.35us grid step).
    if (n_p // tm) == 1 and (o_p // tn) == 1 and n_p >= 16:
        tm = _round_up(pl.cdiv(n_p, 2), 8)
        n_p = _round_up(n_p, tm)

    x_p = jnp.pad(x, ((0, n_p - n), (0, k_p - in_f)))
    w_p = jnp.pad(w_t, ((0, k_p - in_f), (0, o_p - out_f)))
    b_p = jnp.pad(bias.reshape(1, out_f), ((0, 0), (0, o_p - out_f)))

    grid = (n_p // tm, o_p // tn, k_p // tk)

    out = pl.pallas_call(
        _matmul_bias_kernel,
        out_shape=jax.ShapeDtypeStruct((n_p, o_p), jnp.float32),
        grid_spec=pltpu.PrefetchScalarGridSpec(
            num_scalar_prefetch=0,
            grid=grid,
            in_specs=[
                pl.BlockSpec((tm, tk), lambda i, j, k: (i, k)),   # x tile
                pl.BlockSpec((tk, tn), lambda i, j, k: (k, j)),   # w (K-major) tile
                pl.BlockSpec((1, tn), lambda i, j, k: (0, j)),    # bias tile
            ],
            # Output block index ignores k -> o_ref stays resident across the
            # K reduction; it doubles as the f32 accumulator (no VMEM scratch).
            out_specs=pl.BlockSpec((tm, tn), lambda i, j, k: (i, j)),
        ),
        compiler_params=pltpu.CompilerParams(
            # M and N shard across TensorCores (megacore / v7x 2 TC); K is the
            # resident-accumulator reduction axis.
            dimension_semantics=("parallel", "parallel", "arbitrary"),
            vmem_limit_bytes=_vmem_limit_bytes(),
        ),
        cost_estimate=pl.CostEstimate(
            flops=2 * n * in_f * out_f,
            transcendentals=0,
            bytes_accessed=4 * (x.size + weight.size + bias.size + n * out_f),
        ),
    )(x_p, w_p, b_p)
    return out[:n, :out_f]


def regression_model(x, weight, bias):
    """Forward pass of RegressionModel (single affine layer) as Pallas kernels.

    x:      (N, in_features) float32
    weight: (out_features, in_features) float32
    bias:   (out_features,) float32
    returns (N, out_features) float32
    """
    _, in_f = x.shape
    out_f = weight.shape[0]
    if in_f == 1 and out_f == 1:
        return _linear_scalar(x, weight, bias)
    return _linear_general(x, weight, bias)


if __name__ == "__main__":
    key = jax.random.PRNGKey(0)
    kx, kw, kb = jax.random.split(key, 3)

    # --- Module's actual shape: (batch, 1) -> (batch, 1), lane-dense VPU path ---
    input_size = 1
    output_size = 1
    batch = 8

    # x mirrors `torch.tensor(x).unsqueeze(1)` -> shape (N, 1)
    x = jax.random.normal(kx, (batch, input_size), dtype=jnp.float32)

    # Same distribution family as torch.nn.Linear init: U[-1/sqrt(in), 1/sqrt(in)].
    bound = 1.0 / (input_size ** 0.5)
    weight = jax.random.uniform(
        kw, (output_size, input_size), dtype=jnp.float32, minval=-bound, maxval=bound
    )
    bias = jax.random.uniform(
        kb, (output_size,), dtype=jnp.float32, minval=-bound, maxval=bound
    )

    y = regression_model(x, weight, bias)
    jax.block_until_ready(y)
    y_ref = x @ weight.T + bias
    assert y.shape == (batch, output_size)
    assert jnp.allclose(y, y_ref, atol=1e-5, rtol=1e-5)

    # --- Exercise the general tiled MXU path (K=384 single-step, no scratch) ---
    k3, k4, k5 = jax.random.split(jax.random.PRNGKey(1), 3)
    n2, in2, out2 = 48, 300, 20
    x2 = jax.random.normal(k3, (n2, in2), dtype=jnp.float32)
    w2 = jax.random.normal(k4, (out2, in2), dtype=jnp.float32) * (in2 ** -0.5)
    b2 = jax.random.normal(k5, (out2,), dtype=jnp.float32)

    y2 = regression_model(x2, w2, b2)
    jax.block_until_ready(y2)
    y2_ref = x2 @ w2.T + b2
    assert y2.shape == (n2, out2)
    # Loose tolerance: MXU default precision uses bf16 passes for f32 operands.
    assert jnp.allclose(y2, y2_ref, atol=1e-2, rtol=1e-2)

    print("KERNEL_OK")
</pallas_src>

<mosaic_0001>
module attributes {stable_mosaic.version = 11 : i64} {
  func.func @_scalar_affine_kernel(%arg0: i32, %arg1: memref<1x1xf32, #tpu.memory_space<smem>>, %arg2: memref<1x1xf32, #tpu.memory_space<smem>>, %arg3: memref<8x128xf32, #tpu.memory_space<vmem>>, %arg4: memref<8x128xf32, #tpu.memory_space<vmem>>) attributes {dimension_semantics = [#tpu.dimension_semantics<parallel>], iteration_bounds = array<i64: 1>, scalar_prefetch = 0 : i64, scratch_operands = 0 : i64, tpu.core_type = #tpu.core_type<tc>, window_params = [{transform_indices = @transform_0, window_bounds = array<i64: 1, 1>}, {transform_indices = @transform_1, window_bounds = array<i64: 1, 1>}, {transform_indices = @transform_2, window_bounds = array<i64: 8, 128>}, {transform_indices = @transform_3, window_bounds = array<i64: 8, 128>}]} {
    %c0 = arith.constant 0 : index
    %c0_0 = arith.constant 0 : index
    %0 = vector.load %arg3[%c0, %c0_0] : memref<8x128xf32, #tpu.memory_space<vmem>>, vector<8x128xf32>
    %c0_1 = arith.constant 0 : index
    %c0_2 = arith.constant 0 : index
    %1 = memref.load %arg1[%c0_1, %c0_2] : memref<1x1xf32, #tpu.memory_space<smem>>
    %2 = vector.broadcast %1 : f32 to vector<8x128xf32>
    %3 = arith.mulf %0, %2 : vector<8x128xf32>
    %c0_3 = arith.constant 0 : index
    %c0_4 = arith.constant 0 : index
    %4 = memref.load %arg2[%c0_3, %c0_4] : memref<1x1xf32, #tpu.memory_space<smem>>
    %5 = vector.broadcast %4 : f32 to vector<8x128xf32>
    %6 = arith.addf %3, %5 : vector<8x128xf32>
    %c0_5 = arith.constant 0 : index
    %c0_6 = arith.constant 0 : index
    %7 = vector.load %arg4[%c0_5, %c0_6] : memref<8x128xf32, #tpu.memory_space<vmem>>, vector<8x128xf32>
    tpu.vector_store %arg4[%c0_5, %c0_6], %6 {strides = array<i32>} : memref<8x128xf32, #tpu.memory_space<vmem>>, vector<8x128xf32>,
    return
  }
  func.func @transform_0(%arg0: i32) -> (i32, i32) {
    %c0_i32 = arith.constant 0 : i32
    %c0_i32_0 = arith.constant 0 : i32
    %c0_i32_1 = arith.constant 0 : i32
    return %c0_i32, %c0_i32_0 : i32, i32
  }
  func.func @transform_1(%arg0: i32) -> (i32, i32) {
    %c0_i32 = arith.constant 0 : i32
    %c0_i32_0 = arith.constant 0 : i32
    %c0_i32_1 = arith.constant 0 : i32
    return %c0_i32, %c0_i32_0 : i32, i32
  }
  func.func @transform_2(%arg0: i32) -> (i32, i32) {
    %c0_i32 = arith.constant 0 : i32
    %c0_i32_0 = arith.constant 0 : i32
    return %arg0, %c0_i32 : i32, i32
  }
  func.func @transform_3(%arg0: i32) -> (i32, i32) {
    %c0_i32 = arith.constant 0 : i32
    %c0_i32_0 = arith.constant 0 : i32
    return %arg0, %c0_i32 : i32, i32
  }
}

</mosaic_0001>

<bundles_post_ra>
// kernel: tpu_custom_call.1
= control target key start
LH: loop header
LB: loop body
LE: loop exit
PB: predicated region body
PF: predicated region fallthrough
CT: control target
= control target key end

     0   :  { %10 = vsyncpa [#allocation5], 0  ;;  %s154_s0 = inlined_call_operand.<no memory space> [shape: f32[1,1], index: 0, kind: input, shape index: {}]   ;;  %s155_s1 = inlined_call_operand.<no memory space> [shape: f32[1,1], index: 1, kind: input, shape index: {}]   ;;  %s156_s2 = inlined_call_operand.hbm [shape: f32[8,128], index: 2, kind: input, shape index: {}]   ;;  %s157_s3 = inlined_call_operand.hbm [shape: f32[8,128], index: 3, kind: output, shape index: {}]  }
   0x1   :  { %11 = vsyncpa [#allocation6], 0  ;;  %s102_s12 = smov [#allocation4]   ;;  %s54_s16 = scalar_lea.hbm %s156_s2, 128 }
   0x2   :  { %s22_s13 = sshll.u32 %s102_s12, 4  ;;  %p55_p0 = scmp.ne.s32.totalorder %s156_s2, %s54_s16  ;;  %s23_s13 = int_to_ptr.vmem [resolvable:$true] %s22_s13 }
   0x3   :  { %p58_p1 = scmp.lt.u32.totalorder %s54_s16, %s156_s2 }
   0x5   :  { %p60_p2 = pnand %p58_p1, %p55_p0 }
   0x7   :  { %63 = shalt.err (!%p60_p2)
}
   0x8   :  { %s64_s21 = scalar_lea.vmem %s23_s13, 128  ;;  %p69_p4 = scmp.lt.s32.totalorder %s23_s13, %s23_s13 }
   0x9   :  { %p65_p3 = scmp.ne.s32.totalorder %s23_s13, %s64_s21  ;;  %p70_p5 = scmp.lt.s32.totalorder %s64_s21, %s64_s21 }
   0xb   :  { %p71_p6 = por %p70_p5, %p69_p4 }
   0xd   :  { %p72_p7 = pnand %p71_p6, %p65_p3 }
   0xf   :  { %75 = shalt.err (!%p72_p7)
}
  0x10   :  { %25 = dma.hbm_to_vmem [thread:$0]  %s156_s2, 128, %s23_s13, [#allocation5]  }
  0x11   :  { %98 = dma.done.wait [#allocation5], 128  }
  0x12   :  { %99 = vsyncadd [#allocation5], 4294967168  ;;  %v31_v0 = vstv %s154_s0  ;;  %v29_v1 = vld [vmem:[#allocation4] sm:$0xff]  ;;  %v34_v2 = vstv %s155_s1  ;;  %s103_s28 = smov [#allocation7]  }
  0x13   :  { %s43_s29 = sshll.u32 %s103_s28, 4  ;;  %v32_v3 = vmul.f32 %v31_v0, %v29_v1  ;;  %s44_s29 = int_to_ptr.vmem [resolvable:$true] %s43_s29 }
  0x14   :  { %s76_s30 = scalar_lea.vmem %s44_s29, 128  ;;  %p81_p9 = scmp.lt.s32.totalorder %s44_s29, %s44_s29 }
  0x15   :  { %v35_v4 = vadd.f32 %v34_v2, %v32_v3  ;;  %p77_p8 = scmp.ne.s32.totalorder %s44_s29, %s76_s30  ;;  %p82_p10 = scmp.lt.s32.totalorder %s76_s30, %s76_s30 }
  0x17   :  { %36 = vst [vmem:[#allocation7] sm:$0xff] %v35_v4  ;;  %p83_p11 = por %p82_p10, %p81_p9 }
  0x19   :  { %p84_p12 = pnand %p83_p11, %p77_p8 }
  0x1b   :  { %87 = shalt.err (!%p84_p12)
}
  0x1c   :  { %s88_s4 = scalar_lea.hbm %s157_s3, 128 }
  0x1d   :  { %p89_p13 = scmp.ne.s32.totalorder %s157_s3, %s88_s4  ;;  %p92_p0 = scmp.lt.u32.totalorder %s88_s4, %s157_s3 }
  0x1f   :  { %p94_p1 = pnand %p92_p0, %p89_p13 }
  0x21   :  { %97 = shalt.err (!%p94_p1)
}
  0x22   :  { %46 = dma.vmem_to_hbm [thread:$0]  %s44_s29, 128, %s157_s3, [#allocation6]  }
  0x23   :  { %100 = dma.done.wait [#allocation6], 128  }
  0x24   :  { %101 = vsyncadd [#allocation6], 4294967168 }
  0x25   :  { %50 = vsyncpa [#allocation5], 1 }
  0x26   :  { %51 = vsyncpa [#allocation6], 1 }

</bundles_post_ra>
